<compile_context>
chip_gen: v7x
topology: tpu7x:2x2x1
jax: 0.10.0
libtpu: 0.0.40
codegen_flags: <defaults>
</compile_context>

<pallas_src>
import random

import numpy as np
import jax
import jax.numpy as jnp
from jax import lax
from jax.experimental import pallas as pl
from jax.experimental.pallas import tpu as pltpu

GRAN = 8      # sublanes per vreg granule (recurrence step block)


# ------------------------------- Pallas kernel ------------------------------ #
def _spec_transform_kernel(coef_ref, x_ref, o_ref, carry_ref):
    # coef_ref : SMEM (10,) f32 -> [b0,b1,b2,a1,a2] for stage 1 then stage 2 (a0=1).
    # x_ref    : VMEM (tile_t, lanes) input block (time on sublanes, channels on lanes).
    # o_ref    : VMEM (tile_t, lanes) output block.
    # carry_ref: VMEM (8, lanes) f32 recurrence state carried across time tiles:
    #            rows 0..3: stage-1 x[-2], x[-1], y[-2], y[-1]   (y unclamped)
    #            rows 4..7: stage-2 u[-2], u[-1], y[-2], y[-1]   (u = clamped stage-1 out)
    tile_t, lanes = x_ref.shape
    n_gran = tile_t // GRAN

    # Reset the carried state at the first time tile of each lane block.
    @pl.when(pl.program_id(1) == 0)
    def _():
        carry_ref[...] = jnp.zeros_like(carry_ref)

    carry = carry_ref[...]                               # single (8,lanes) load

    # --- coefficient splats hoisted out of the loop (no broadcast re-emission) ---
    def splat(i, rows):
        return jnp.broadcast_to(coef_ref[i], (rows, lanes)).astype(jnp.float32)

    b0a, b1a, b2a = splat(0, GRAN), splat(1, GRAN), splat(2, GRAN)
    a1a, a2a = splat(3, 1), splat(4, 1)
    b0b, b1b, b2b = splat(5, GRAN), splat(6, GRAN), splat(7, GRAN)
    a1b, a2b = splat(8, 1), splat(9, 1)

    def fir(xg, x1, x2, b0, b1, b2):
        # Vectorized feed-forward over the whole granule: element ordering is identical
        # to the scalar form b0*x[t] + b1*x[t-1] + b2*x[t-2].
        xs1 = jnp.concatenate([x1, xg[:GRAN - 1, :]], axis=0)        # x[t-1]
        xs2 = jnp.concatenate([x2, x1, xg[:GRAN - 2, :]], axis=0)    # x[t-2]
        return b0 * xg + b1 * xs1 + b2 * xs2

    def iir(ft, y1, y2, a1, a2):
        # Only the 2-tap feedback stays serial (8 straight-line steps per granule).
        rows = []
        for _r in range(GRAN):
            yt = ft[_r:_r + 1, :] - a1 * y1 - a2 * y2
            rows.append(yt)
            y2, y1 = y1, yt
        return jnp.concatenate(rows, axis=0), y1, y2

    def stage1(base, x1, x2, y1, y2):
        xg = x_ref[pl.ds(base, GRAN), :].astype(jnp.float32)         # one (8,lanes) load
        ft = fir(xg, x1, x2, b0a, b1a, b2a)
        yblk, y1, y2 = iir(ft, y1, y2, a1a, a2a)
        ublk = jnp.clip(yblk, -1.0, 1.0)                             # clamp stored output
        return ublk, xg[GRAN - 1:GRAN, :], xg[GRAN - 2:GRAN - 1, :], y1, y2

    def stage2(base, ublk, u1, u2, w1, w2):
        ft = fir(ublk, u1, u2, b0b, b1b, b2b)
        wblk, w1, w2 = iir(ft, w1, w2, a1b, a2b)
        o_ref[pl.ds(base, GRAN), :] = jnp.clip(wblk, -1.0, 1.0).astype(o_ref.dtype)
        return ublk[GRAN - 1:GRAN, :], ublk[GRAN - 2:GRAN - 1, :], w1, w2

    # ---- software-pipelined cascade --------------------------------------------
    # Prologue (pipeline fill): stage-1 of granule 0.
    u_prev, x1, x2, y1, y2 = stage1(
        0, carry[1:2, :], carry[0:1, :], carry[3:4, :], carry[2:3, :])
    st = (x1, x2, y1, y2,
          carry[5:6, :], carry[4:5, :], carry[7:8, :], carry[6:7, :],
          u_prev)

    def body(g, st):
        x1, x2, y1, y2, u1, u2, w1, w2, u_prev = st
        base = pl.multiple_of(g * GRAN, GRAN)
        obase = pl.multiple_of((g - 1) * GRAN, GRAN)
        # Stage-1 on granule g and stage-2 on granule g-1: two independent feedback
        # chains in one basic block -> the scheduler interleaves them.
        u_blk, x1, x2, y1, y2 = stage1(base, x1, x2, y1, y2)
        u1, u2, w1, w2 = stage2(obase, u_prev, u1, u2, w1, w2)
        return (x1, x2, y1, y2, u1, u2, w1, w2, u_blk)

    # unroll=1: ILP comes from the two interleaved chains; deeper unroll risks vreg spills.
    x1, x2, y1, y2, u1, u2, w1, w2, u_prev = lax.fori_loop(1, n_gran, body, st)

    # Epilogue (pipeline drain): stage-2 of the last granule.
    u1, u2, w1, w2 = stage2((n_gran - 1) * GRAN, u_prev, u1, u2, w1, w2)

    # Persist recurrence state for the next time tile (one (8,lanes) store).
    carry_ref[...] = jnp.concatenate([x2, x1, y2, y1, u2, u1, w2, w1], axis=0)


# --------------------------------- wrapper ---------------------------------- #
def biquad_cascade_pallas(x, coefs, tile_t=2048, lane_block=None):
    """Apply the two-biquad cascade to x of shape (B, C, T)."""
    B, C, T = x.shape
    N = B * C

    if lane_block is None:
        # Full-extent lane block when N <= 128 -> no lane padding, no padded DMA traffic.
        lane_block = N if N <= 128 else 128
    n_pad = -(-N // lane_block) * lane_block
    t_pad = -(-T // GRAN) * GRAN                       # only pads when T % 8 != 0
    tile_t = max(GRAN, -(-min(tile_t, t_pad) // GRAN) * GRAN)

    # (B, C, T) -> (T, N): time on sublanes, flattened channels on lanes.
    xt = jnp.transpose(x.reshape(N, T), (1, 0))
    if (t_pad, n_pad) != (T, N):
        xt = jnp.pad(xt, ((0, t_pad - T), (0, n_pad - N)))

    grid = (n_pad // lane_block, -(-t_pad // tile_t))   # partial last time tile is masked

    out = pl.pallas_call(
        _spec_transform_kernel,
        out_shape=jax.ShapeDtypeStruct((t_pad, n_pad), x.dtype),
        grid=grid,
        in_specs=[
            pl.BlockSpec(memory_space=pltpu.MemorySpace.SMEM),        # coefficients
            pl.BlockSpec((tile_t, lane_block), lambda j, t: (t, j)),  # input time block
        ],
        out_specs=pl.BlockSpec((tile_t, lane_block), lambda j, t: (t, j)),
        scratch_shapes=[
            pltpu.VMEM((GRAN, lane_block), jnp.float32),   # carried DF1 state (both stages)
        ],
        compiler_params=pltpu.CompilerParams(
            dimension_semantics=("parallel", "arbitrary")),
    )(coefs, xt)

    if (t_pad, n_pad) != (T, N):
        out = out[:T, :N]
    return jnp.transpose(out, (1, 0)).reshape(B, C, T)


# -------------------------- SpecTransform in JAX ---------------------------- #
class SpecTransformPallas:
    """JAX/Pallas port of SpecTransform (random spectral shaping via two biquads)."""

    def __init__(self, p: float = 0.5, tile_t: int = 2048) -> None:
        self.a_hp = (-1.99599, 0.996)
        self.b_hp = (-2.0, 1.0)
        self.p = p
        self.tile_t = tile_t

    def _uni_rand(self) -> float:
        return random.random() - 0.5

    def _rand_resp(self):
        a1 = 0.75 * self._uni_rand()
        a2 = 0.75 * self._uni_rand()
        b1 = 0.75 * self._uni_rand()
        b2 = 0.75 * self._uni_rand()
        return a1, a2, b1, b2

    def _coefs(self, a1, a2, b1, b2):
        # biquad(x, b0, b1, b2, a0, a1, a2) with a0 = 1 for both stages.
        return jnp.array(
            [1.0, self.b_hp[0], self.b_hp[1], self.a_hp[0], self.a_hp[1],
             1.0, b1, b2, a1, a2], dtype=jnp.float32)

    def __call__(self, x):
        if isinstance(x, np.ndarray):
            x = jnp.asarray(x)
        if random.random() <= self.p:
            a1, a2, b1, b2 = self._rand_resp()
            x = biquad_cascade_pallas(x, self._coefs(a1, a2, b1, b2),
                                      tile_t=self.tile_t)
        return x


# ----------------------------- pure-JAX reference ---------------------------- #
def _biquad_ref(x, b0, b1, b2, a1, a2):
    # x: (N, T) f32; DF1 biquad with lfilter(clamp=True) semantics.
    def step(carry, xt):
        x1, x2, y1, y2 = carry
        ft = b0 * xt + b1 * x1 + b2 * x2
        yt = ft - a1 * y1 - a2 * y2
        return (xt, x1, yt, y1), yt

    z = jnp.zeros((x.shape[0],), jnp.float32)
    _, ys = lax.scan(step, (z, z, z, z), x.T)
    return jnp.clip(ys.T, -1.0, 1.0)


def _spec_transform_ref(x, coefs):
    B, C, T = x.shape
    xf = x.reshape(B * C, T).astype(jnp.float32)
    c = [float(coefs[i]) for i in range(10)]
    y = _biquad_ref(xf, *c[0:5])
    y = _biquad_ref(y, *c[5:10])
    return y.reshape(B, C, T).astype(x.dtype)


if __name__ == "__main__":
    # Deterministic host-side randomness; p=1.0 guarantees the filter path runs.
    random.seed(0)
    transform = SpecTransformPallas(p=1.0, tile_t=1024)

    key = jax.random.PRNGKey(0)
    B, C, T = 2, 4, 4096          # 4 time tiles -> exercises the cross-tile state carry
    x = 0.5 * jax.random.normal(key, (B, C, T), dtype=jnp.float32)

    y = jax.block_until_ready(transform(x))

    # Rebuild the same random coefficients for an independent sequential reference.
    random.seed(0)
    _ = random.random()                     # the apply-decision draw
    a1 = 0.75 * (random.random() - 0.5)
    a2 = 0.75 * (random.random() - 0.5)
    b1 = 0.75 * (random.random() - 0.5)
    b2 = 0.75 * (random.random() - 0.5)
    coefs = transform._coefs(a1, a2, b1, b2)
    y_ref = _spec_transform_ref(x, coefs)

    assert y.shape == x.shape
    # Kernel and reference use identical per-element f32 op ordering (typical diff ~1e-6);
    # tolerance stays loose because the high-pass poles at |z|~0.998 amplify any
    # rounding-order delta.
    assert jnp.allclose(y, y_ref, atol=1e-3, rtol=1e-3), "mismatch vs reference"
    print("KERNEL_OK")
</pallas_src>

<mosaic_0001>
module attributes {stable_mosaic.version = 11 : i64} {
  func.func @_spec_transform_kernel(%arg0: i32, %arg1: i32, %arg2: memref<10xf32, #tpu.memory_space<smem>>, %arg3: memref<1024x8xf32, #tpu.memory_space<vmem>>, %arg4: memref<1024x8xf32, #tpu.memory_space<vmem>>, %arg5: memref<8x8xf32, #tpu.memory_space<vmem>>) attributes {dimension_semantics = [#tpu.dimension_semantics<parallel>, #tpu.dimension_semantics<arbitrary>], iteration_bounds = array<i64: 1, 4>, scalar_prefetch = 0 : i64, scratch_operands = 1 : i64, tpu.core_type = #tpu.core_type<tc>, window_params = [{transform_indices = @transform_0, window_bounds = array<i64: 10>}, {transform_indices = @transform_1, window_bounds = array<i64: 1024, 8>}, {transform_indices = @transform_2, window_bounds = array<i64: 1024, 8>}]} {
    %c0_i32 = arith.constant 0 : i32
    %0 = arith.cmpi eq, %arg1, %c0_i32 : i32
    %1 = arith.extui %0 : i1 to i32
    %c0_i32_0 = arith.constant 0 : i32
    %2 = arith.cmpi ne, %1, %c0_i32_0 : i32
    scf.if %2 {
      %cst_13 = arith.constant 0.000000e+00 : f32
      %150 = vector.broadcast %cst_13 : f32 to vector<8x8xf32>
      %c0_14 = arith.constant 0 : index
      %c0_15 = arith.constant 0 : index
      %151 = vector.load %arg5[%c0_14, %c0_15] : memref<8x8xf32, #tpu.memory_space<vmem>>, vector<8x8xf32>
      tpu.vector_store %arg5[%c0_14, %c0_15], %150 {strides = array<i32>} : memref<8x8xf32, #tpu.memory_space<vmem>>, vector<8x8xf32>,
    } else {
    }
    %c0 = arith.constant 0 : index
    %c0_1 = arith.constant 0 : index
    %3 = vector.load %arg5[%c0, %c0_1] : memref<8x8xf32, #tpu.memory_space<vmem>>, vector<8x8xf32>
    %c0_2 = arith.constant 0 : index
    %4 = memref.load %arg2[%c0_2] : memref<10xf32, #tpu.memory_space<smem>>
    %5 = vector.broadcast %4 : f32 to vector<8x8xf32>
    %c1 = arith.constant 1 : index
    %6 = memref.load %arg2[%c1] : memref<10xf32, #tpu.memory_space<smem>>
    %7 = vector.broadcast %6 : f32 to vector<8x8xf32>
    %c2 = arith.constant 2 : index
    %8 = memref.load %arg2[%c2] : memref<10xf32, #tpu.memory_space<smem>>
    %9 = vector.broadcast %8 : f32 to vector<8x8xf32>
    %c3 = arith.constant 3 : index
    %10 = memref.load %arg2[%c3] : memref<10xf32, #tpu.memory_space<smem>>
    %11 = vector.broadcast %10 : f32 to vector<1x8xf32>
    %c4 = arith.constant 4 : index
    %12 = memref.load %arg2[%c4] : memref<10xf32, #tpu.memory_space<smem>>
    %13 = vector.broadcast %12 : f32 to vector<1x8xf32>
    %c5 = arith.constant 5 : index
    %14 = memref.load %arg2[%c5] : memref<10xf32, #tpu.memory_space<smem>>
    %15 = vector.broadcast %14 : f32 to vector<8x8xf32>
    %c6 = arith.constant 6 : index
    %16 = memref.load %arg2[%c6] : memref<10xf32, #tpu.memory_space<smem>>
    %17 = vector.broadcast %16 : f32 to vector<8x8xf32>
    %c7 = arith.constant 7 : index
    %18 = memref.load %arg2[%c7] : memref<10xf32, #tpu.memory_space<smem>>
    %19 = vector.broadcast %18 : f32 to vector<8x8xf32>
    %c8 = arith.constant 8 : index
    %20 = memref.load %arg2[%c8] : memref<10xf32, #tpu.memory_space<smem>>
    %21 = vector.broadcast %20 : f32 to vector<1x8xf32>
    %c9 = arith.constant 9 : index
    %22 = memref.load %arg2[%c9] : memref<10xf32, #tpu.memory_space<smem>>
    %23 = vector.broadcast %22 : f32 to vector<1x8xf32>
    %24 = vector.extract_strided_slice %3 {offsets = [1, 0], sizes = [1, 8], strides = [1, 1]} : vector<8x8xf32> to vector<1x8xf32>
    %25 = vector.extract_strided_slice %3 {offsets = [0, 0], sizes = [1, 8], strides = [1, 1]} : vector<8x8xf32> to vector<1x8xf32>
    %26 = vector.extract_strided_slice %3 {offsets = [3, 0], sizes = [1, 8], strides = [1, 1]} : vector<8x8xf32> to vector<1x8xf32>
    %27 = vector.extract_strided_slice %3 {offsets = [2, 0], sizes = [1, 8], strides = [1, 1]} : vector<8x8xf32> to vector<1x8xf32>
    %c0_3 = arith.constant 0 : index
    %c0_4 = arith.constant 0 : index
    %28 = vector.load %arg3[%c0_3, %c0_4] : memref<1024x8xf32, #tpu.memory_space<vmem>>, vector<8x8xf32>
    %29 = vector.extract_strided_slice %28 {offsets = [0, 0], sizes = [7, 8], strides = [1, 1]} : vector<8x8xf32> to vector<7x8xf32>
    %30 = tpu.concatenate %24, %29 in 0 : vector<1x8xf32>, vector<7x8xf32> -> vector<8x8xf32>
    %31 = vector.extract_strided_slice %28 {offsets = [0, 0], sizes = [6, 8], strides = [1, 1]} : vector<8x8xf32> to vector<6x8xf32>
    %32 = tpu.concatenate %25, %24, %31 in 0 : vector<1x8xf32>, vector<1x8xf32>, vector<6x8xf32> -> vector<8x8xf32>
    %33 = arith.mulf %5, %28 : vector<8x8xf32>
    %34 = arith.mulf %7, %30 : vector<8x8xf32>
    %35 = arith.addf %33, %34 : vector<8x8xf32>
    %36 = arith.mulf %9, %32 : vector<8x8xf32>
    %37 = arith.addf %35, %36 : vector<8x8xf32>
    %38 = vector.extract_strided_slice %37 {offsets = [0, 0], sizes = [1, 8], strides = [1, 1]} : vector<8x8xf32> to vector<1x8xf32>
    %39 = arith.mulf %11, %26 : vector<1x8xf32>
    %40 = arith.subf %38, %39 : vector<1x8xf32>
    %41 = arith.mulf %13, %27 : vector<1x8xf32>
    %42 = arith.subf %40, %41 : vector<1x8xf32>
    %43 = vector.extract_strided_slice %37 {offsets = [1, 0], sizes = [1, 8], strides = [1, 1]} : vector<8x8xf32> to vector<1x8xf32>
    %44 = arith.mulf %11, %42 : vector<1x8xf32>
    %45 = arith.subf %43, %44 : vector<1x8xf32>
    %46 = arith.mulf %13, %26 : vector<1x8xf32>
    %47 = arith.subf %45, %46 : vector<1x8xf32>
    %48 = vector.extract_strided_slice %37 {offsets = [2, 0], sizes = [1, 8], strides = [1, 1]} : vector<8x8xf32> to vector<1x8xf32>
    %49 = arith.mulf %11, %47 : vector<1x8xf32>
    %50 = arith.subf %48, %49 : vector<1x8xf32>
    %51 = arith.mulf %13, %42 : vector<1x8xf32>
    %52 = arith.subf %50, %51 : vector<1x8xf32>
    %53 = vector.extract_strided_slice %37 {offsets = [3, 0], sizes = [1, 8], strides = [1, 1]} : vector<8x8xf32> to vector<1x8xf32>
    %54 = arith.mulf %11, %52 : vector<1x8xf32>
    %55 = arith.subf %53, %54 : vector<1x8xf32>
    %56 = arith.mulf %13, %47 : vector<1x8xf32>
    %57 = arith.subf %55, %56 : vector<1x8xf32>
    %58 = vector.extract_strided_slice %37 {offsets = [4, 0], sizes = [1, 8], strides = [1, 1]} : vector<8x8xf32> to vector<1x8xf32>
    %59 = arith.mulf %11, %57 : vector<1x8xf32>
    %60 = arith.subf %58, %59 : vector<1x8xf32>
    %61 = arith.mulf %13, %52 : vector<1x8xf32>
    %62 = arith.subf %60, %61 : vector<1x8xf32>
    %63 = vector.extract_strided_slice %37 {offsets = [5, 0], sizes = [1, 8], strides = [1, 1]} : vector<8x8xf32> to vector<1x8xf32>
    %64 = arith.mulf %11, %62 : vector<1x8xf32>
    %65 = arith.subf %63, %64 : vector<1x8xf32>
    %66 = arith.mulf %13, %57 : vector<1x8xf32>
    %67 = arith.subf %65, %66 : vector<1x8xf32>
    %68 = vector.extract_strided_slice %37 {offsets = [6, 0], sizes = [1, 8], strides = [1, 1]} : vector<8x8xf32> to vector<1x8xf32>
    %69 = arith.mulf %11, %67 : vector<1x8xf32>
    %70 = arith.subf %68, %69 : vector<1x8xf32>
    %71 = arith.mulf %13, %62 : vector<1x8xf32>
    %72 = arith.subf %70, %71 : vector<1x8xf32>
    %73 = vector.extract_strided_slice %37 {offsets = [7, 0], sizes = [1, 8], strides = [1, 1]} : vector<8x8xf32> to vector<1x8xf32>
    %74 = arith.mulf %11, %72 : vector<1x8xf32>
    %75 = arith.subf %73, %74 : vector<1x8xf32>
    %76 = arith.mulf %13, %67 : vector<1x8xf32>
    %77 = arith.subf %75, %76 : vector<1x8xf32>
    %78 = tpu.concatenate %42, %47, %52, %57, %62, %67, %72, %77 in 0 : vector<1x8xf32>, vector<1x8xf32>, vector<1x8xf32>, vector<1x8xf32>, vector<1x8xf32>, vector<1x8xf32>, vector<1x8xf32>, vector<1x8xf32> -> vector<8x8xf32>
    %cst = arith.constant -1.000000e+00 : f32
    %cst_5 = arith.constant 1.000000e+00 : f32
    %79 = vector.broadcast %cst : f32 to vector<8x8xf32>
    %80 = arith.maximumf %79, %78 : vector<8x8xf32>
    %81 = vector.broadcast %cst_5 : f32 to vector<8x8xf32>
    %82 = arith.minimumf %81, %80 : vector<8x8xf32>
    %83 = vector.extract_strided_slice %28 {offsets = [7, 0], sizes = [1, 8], strides = [1, 1]} : vector<8x8xf32> to vector<1x8xf32>
    %84 = vector.extract_strided_slice %28 {offsets = [6, 0], sizes = [1, 8], strides = [1, 1]} : vector<8x8xf32> to vector<1x8xf32>
    %85 = vector.extract_strided_slice %3 {offsets = [5, 0], sizes = [1, 8], strides = [1, 1]} : vector<8x8xf32> to vector<1x8xf32>
    %86 = vector.extract_strided_slice %3 {offsets = [4, 0], sizes = [1, 8], strides = [1, 1]} : vector<8x8xf32> to vector<1x8xf32>
    %87 = vector.extract_strided_slice %3 {offsets = [7, 0], sizes = [1, 8], strides = [1, 1]} : vector<8x8xf32> to vector<1x8xf32>
    %88 = vector.extract_strided_slice %3 {offsets = [6, 0], sizes = [1, 8], strides = [1, 1]} : vector<8x8xf32> to vector<1x8xf32>
    %c1_i32 = arith.constant 1 : i32
    %c127_i32 = arith.constant 127 : i32
    %89 = arith.addi %c1_i32, %c127_i32 : i32
    %c1_i32_6 = arith.constant 1 : i32
    %90:9 = scf.for %arg6 = %c1_i32 to %89 step %c1_i32_6 iter_args(%arg7 = %83, %arg8 = %84, %arg9 = %77, %arg10 = %72, %arg11 = %85, %arg12 = %86, %arg13 = %87, %arg14 = %88, %arg15 = %82) -> (vector<1x8xf32>, vector<1x8xf32>, vector<1x8xf32>, vector<1x8xf32>, vector<1x8xf32>, vector<1x8xf32>, vector<1x8xf32>, vector<1x8xf32>, vector<8x8xf32>)  : i32 {
      %c8_i32 = arith.constant 8 : i32
      %150 = arith.muli %arg6, %c8_i32 : i32
      %151 = tpu.assume_multiple %150, 8 : i32
      %c1_i32_13 = arith.constant 1 : i32
      %152 = arith.subi %arg6, %c1_i32_13 : i32
      %c8_i32_14 = arith.constant 8 : i32
      %153 = arith.muli %152, %c8_i32_14 : i32
      %154 = tpu.assume_multiple %153, 8 : i32
      %155 = arith.index_cast %151 : i32 to index
      %c0_15 = arith.constant 0 : index
      %156 = vector.load %arg3[%155, %c0_15] : memref<1024x8xf32, #tpu.memory_space<vmem>>, vector<8x8xf32>
      %157 = vector.extract_strided_slice %156 {offsets = [0, 0], sizes = [7, 8], strides = [1, 1]} : vector<8x8xf32> to vector<7x8xf32>
      %158 = tpu.concatenate %arg7, %157 in 0 : vector<1x8xf32>, vector<7x8xf32> -> vector<8x8xf32>
      %159 = vector.extract_strided_slice %156 {offsets = [0, 0], sizes = [6, 8], strides = [1, 1]} : vector<8x8xf32> to vector<6x8xf32>
      %160 = tpu.concatenate %arg8, %arg7, %159 in 0 : vector<1x8xf32>, vector<1x8xf32>, vector<6x8xf32> -> vector<8x8xf32>
      %161 = arith.mulf %5, %156 : vector<8x8xf32>
      %162 = arith.mulf %7, %158 : vector<8x8xf32>
      %163 = arith.addf %161, %162 : vector<8x8xf32>
      %164 = arith.mulf %9, %160 : vector<8x8xf32>
      %165 = arith.addf %163, %164 : vector<8x8xf32>
      %166 = vector.extract_strided_slice %165 {offsets = [0, 0], sizes = [1, 8], strides = [1, 1]} : vector<8x8xf32> to vector<1x8xf32>
      %167 = arith.mulf %11, %arg9 : vector<1x8xf32>
      %168 = arith.subf %166, %167 : vector<1x8xf32>
      %169 = arith.mulf %13, %arg10 : vector<1x8xf32>
      %170 = arith.subf %168, %169 : vector<1x8xf32>
      %171 = vector.extract_strided_slice %165 {offsets = [1, 0], sizes = [1, 8], strides = [1, 1]} : vector<8x8xf32> to vector<1x8xf32>
      %172 = arith.mulf %11, %170 : vector<1x8xf32>
      %173 = arith.subf %171, %172 : vector<1x8xf32>
      %174 = arith.mulf %13, %arg9 : vector<1x8xf32>
      %175 = arith.subf %173, %174 : vector<1x8xf32>
      %176 = vector.extract_strided_slice %165 {offsets = [2, 0], sizes = [1, 8], strides = [1, 1]} : vector<8x8xf32> to vector<1x8xf32>
      %177 = arith.mulf %11, %175 : vector<1x8xf32>
      %178 = arith.subf %176, %177 : vector<1x8xf32>
      %179 = arith.mulf %13, %170 : vector<1x8xf32>
      %180 = arith.subf %178, %179 : vector<1x8xf32>
      %181 = vector.extract_strided_slice %165 {offsets = [3, 0], sizes = [1, 8], strides = [1, 1]} : vector<8x8xf32> to vector<1x8xf32>
      %182 = arith.mulf %11, %180 : vector<1x8xf32>
      %183 = arith.subf %181, %182 : vector<1x8xf32>
      %184 = arith.mulf %13, %175 : vector<1x8xf32>
      %185 = arith.subf %183, %184 : vector<1x8xf32>
      %186 = vector.extract_strided_slice %165 {offsets = [4, 0], sizes = [1, 8], strides = [1, 1]} : vector<8x8xf32> to vector<1x8xf32>
      %187 = arith.mulf %11, %185 : vector<1x8xf32>
      %188 = arith.subf %186, %187 : vector<1x8xf32>
      %189 = arith.mulf %13, %180 : vector<1x8xf32>
      %190 = arith.subf %188, %189 : vector<1x8xf32>
      %191 = vector.extract_strided_slice %165 {offsets = [5, 0], sizes = [1, 8], strides = [1, 1]} : vector<8x8xf32> to vector<1x8xf32>
      %192 = arith.mulf %11, %190 : vector<1x8xf32>
      %193 = arith.subf %191, %192 : vector<1x8xf32>
      %194 = arith.mulf %13, %185 : vector<1x8xf32>
      %195 = arith.subf %193, %194 : vector<1x8xf32>
      %196 = vector.extract_strided_slice %165 {offsets = [6, 0], sizes = [1, 8], strides = [1, 1]} : vector<8x8xf32> to vector<1x8xf32>
      %197 = arith.mulf %11, %195 : vector<1x8xf32>
      %198 = arith.subf %196, %197 : vector<1x8xf32>
      %199 = arith.mulf %13, %190 : vector<1x8xf32>
      %200 = arith.subf %198, %199 : vector<1x8xf32>
      %201 = vector.extract_strided_slice %165 {offsets = [7, 0], sizes = [1, 8], strides = [1, 1]} : vector<8x8xf32> to vector<1x8xf32>
      %202 = arith.mulf %11, %200 : vector<1x8xf32>
      %203 = arith.subf %201, %202 : vector<1x8xf32>
      %204 = arith.mulf %13, %195 : vector<1x8xf32>
      %205 = arith.subf %203, %204 : vector<1x8xf32>
      %206 = tpu.concatenate %170, %175, %180, %185, %190, %195, %200, %205 in 0 : vector<1x8xf32>, vector<1x8xf32>, vector<1x8xf32>, vector<1x8xf32>, vector<1x8xf32>, vector<1x8xf32>, vector<1x8xf32>, vector<1x8xf32> -> vector<8x8xf32>
      %cst_16 = arith.constant -1.000000e+00 : f32
      %cst_17 = arith.constant 1.000000e+00 : f32
      %207 = vector.broadcast %cst_16 : f32 to vector<8x8xf32>
      %208 = arith.maximumf %207, %206 : vector<8x8xf32>
      %209 = vector.broadcast %cst_17 : f32 to vector<8x8xf32>
      %210 = arith.minimumf %209, %208 : vector<8x8xf32>
      %211 = vector.extract_strided_slice %156 {offsets = [7, 0], sizes = [1, 8], strides = [1, 1]} : vector<8x8xf32> to vector<1x8xf32>
      %212 = vector.extract_strided_slice %156 {offsets = [6, 0], sizes = [1, 8], strides = [1, 1]} : vector<8x8xf32> to vector<1x8xf32>
      %213 = vector.extract_strided_slice %arg15 {offsets = [0, 0], sizes = [7, 8], strides = [1, 1]} : vector<8x8xf32> to vector<7x8xf32>
      %214 = tpu.concatenate %arg11, %213 in 0 : vector<1x8xf32>, vector<7x8xf32> -> vector<8x8xf32>
      %215 = vector.extract_strided_slice %arg15 {offsets = [0, 0], sizes = [6, 8], strides = [1, 1]} : vector<8x8xf32> to vector<6x8xf32>
      %216 = tpu.concatenate %arg12, %arg11, %215 in 0 : vector<1x8xf32>, vector<1x8xf32>, vector<6x8xf32> -> vector<8x8xf32>
      %217 = arith.mulf %15, %arg15 : vector<8x8xf32>
      %218 = arith.mulf %17, %214 : vector<8x8xf32>
      %219 = arith.addf %217, %218 : vector<8x8xf32>
      %220 = arith.mulf %19, %216 : vector<8x8xf32>
      %221 = arith.addf %219, %220 : vector<8x8xf32>
      %222 = vector.extract_strided_slice %221 {offsets = [0, 0], sizes = [1, 8], strides = [1, 1]} : vector<8x8xf32> to vector<1x8xf32>
      %223 = arith.mulf %21, %arg13 : vector<1x8xf32>
      %224 = arith.subf %222, %223 : vector<1x8xf32>
      %225 = arith.mulf %23, %arg14 : vector<1x8xf32>
      %226 = arith.subf %224, %225 : vector<1x8xf32>
      %227 = vector.extract_strided_slice %221 {offsets = [1, 0], sizes = [1, 8], strides = [1, 1]} : vector<8x8xf32> to vector<1x8xf32>
      %228 = arith.mulf %21, %226 : vector<1x8xf32>
      %229 = arith.subf %227, %228 : vector<1x8xf32>
      %230 = arith.mulf %23, %arg13 : vector<1x8xf32>
      %231 = arith.subf %229, %230 : vector<1x8xf32>
      %232 = vector.extract_strided_slice %221 {offsets = [2, 0], sizes = [1, 8], strides = [1, 1]} : vector<8x8xf32> to vector<1x8xf32>
      %233 = arith.mulf %21, %231 : vector<1x8xf32>
      %234 = arith.subf %232, %233 : vector<1x8xf32>
      %235 = arith.mulf %23, %226 : vector<1x8xf32>
      %236 = arith.subf %234, %235 : vector<1x8xf32>
      %237 = vector.extract_strided_slice %221 {offsets = [3, 0], sizes = [1, 8], strides = [1, 1]} : vector<8x8xf32> to vector<1x8xf32>
      %238 = arith.mulf %21, %236 : vector<1x8xf32>
      %239 = arith.subf %237, %238 : vector<1x8xf32>
      %240 = arith.mulf %23, %231 : vector<1x8xf32>
      %241 = arith.subf %239, %240 : vector<1x8xf32>
      %242 = vector.extract_strided_slice %221 {offsets = [4, 0], sizes = [1, 8], strides = [1, 1]} : vector<8x8xf32> to vector<1x8xf32>
      %243 = arith.mulf %21, %241 : vector<1x8xf32>
      %244 = arith.subf %242, %243 : vector<1x8xf32>
      %245 = arith.mulf %23, %236 : vector<1x8xf32>
      %246 = arith.subf %244, %245 : vector<1x8xf32>
      %247 = vector.extract_strided_slice %221 {offsets = [5, 0], sizes = [1, 8], strides = [1, 1]} : vector<8x8xf32> to vector<1x8xf32>
      %248 = arith.mulf %21, %246 : vector<1x8xf32>
      %249 = arith.subf %247, %248 : vector<1x8xf32>
      %250 = arith.mulf %23, %241 : vector<1x8xf32>
      %251 = arith.subf %249, %250 : vector<1x8xf32>
      %252 = vector.extract_strided_slice %221 {offsets = [6, 0], sizes = [1, 8], strides = [1, 1]} : vector<8x8xf32> to vector<1x8xf32>
      %253 = arith.mulf %21, %251 : vector<1x8xf32>
      %254 = arith.subf %252, %253 : vector<1x8xf32>
      %255 = arith.mulf %23, %246 : vector<1x8xf32>
      %256 = arith.subf %254, %255 : vector<1x8xf32>
      %257 = vector.extract_strided_slice %221 {offsets = [7, 0], sizes = [1, 8], strides = [1, 1]} : vector<8x8xf32> to vector<1x8xf32>
      %258 = arith.mulf %21, %256 : vector<1x8xf32>
      %259 = arith.subf %257, %258 : vector<1x8xf32>
      %260 = arith.mulf %23, %251 : vector<1x8xf32>
      %261 = arith.subf %259, %260 : vector<1x8xf32>
      %262 = tpu.concatenate %226, %231, %236, %241, %246, %251, %256, %261 in 0 : vector<1x8xf32>, vector<1x8xf32>, vector<1x8xf32>, vector<1x8xf32>, vector<1x8xf32>, vector<1x8xf32>, vector<1x8xf32>, vector<1x8xf32> -> vector<8x8xf32>
      %cst_18 = arith.constant -1.000000e+00 : f32
      %cst_19 = arith.constant 1.000000e+00 : f32
      %263 = vector.broadcast %cst_18 : f32 to vector<8x8xf32>
      %264 = arith.maximumf %263, %262 : vector<8x8xf32>
      %265 = vector.broadcast %cst_19 : f32 to vector<8x8xf32>
      %266 = arith.minimumf %265, %264 : vector<8x8xf32>
      %267 = arith.index_cast %154 : i32 to index
      %c0_20 = arith.constant 0 : index
      %268 = vector.load %arg4[%267, %c0_20] : memref<1024x8xf32, #tpu.memory_space<vmem>>, vector<8x8xf32>
      tpu.vector_store %arg4[%267, %c0_20], %266 {strides = array<i32>} : memref<1024x8xf32, #tpu.memory_space<vmem>>, vector<8x8xf32>,
      %269 = vector.extract_strided_slice %arg15 {offsets = [7, 0], sizes = [1, 8], strides = [1, 1]} : vector<8x8xf32> to vector<1x8xf32>
      %270 = vector.extract_strided_slice %arg15 {offsets = [6, 0], sizes = [1, 8], strides = [1, 1]} : vector<8x8xf32> to vector<1x8xf32>
      scf.yield %211, %212, %205, %200, %269, %270, %261, %256, %210 : vector<1x8xf32>, vector<1x8xf32>, vector<1x8xf32>, vector<1x8xf32>, vector<1x8xf32>, vector<1x8xf32>, vector<1x8xf32>, vector<1x8xf32>, vector<8x8xf32>
    }
    %c127_i32_7 = arith.constant 127 : i32
    %91 = vector.extract_strided_slice %90#8 {offsets = [0, 0], sizes = [7, 8], strides = [1, 1]} : vector<8x8xf32> to vector<7x8xf32>
    %92 = tpu.concatenate %90#4, %91 in 0 : vector<1x8xf32>, vector<7x8xf32> -> vector<8x8xf32>
    %93 = vector.extract_strided_slice %90#8 {offsets = [0, 0], sizes = [6, 8], strides = [1, 1]} : vector<8x8xf32> to vector<6x8xf32>
    %94 = tpu.concatenate %90#5, %90#4, %93 in 0 : vector<1x8xf32>, vector<1x8xf32>, vector<6x8xf32> -> vector<8x8xf32>
    %95 = arith.mulf %15, %90#8 : vector<8x8xf32>
    %96 = arith.mulf %17, %92 : vector<8x8xf32>
    %97 = arith.addf %95, %96 : vector<8x8xf32>
    %98 = arith.mulf %19, %94 : vector<8x8xf32>
    %99 = arith.addf %97, %98 : vector<8x8xf32>
    %100 = vector.extract_strided_slice %99 {offsets = [0, 0], sizes = [1, 8], strides = [1, 1]} : vector<8x8xf32> to vector<1x8xf32>
    %101 = arith.mulf %21, %90#6 : vector<1x8xf32>
    %102 = arith.subf %100, %101 : vector<1x8xf32>
    %103 = arith.mulf %23, %90#7 : vector<1x8xf32>
    %104 = arith.subf %102, %103 : vector<1x8xf32>
    %105 = vector.extract_strided_slice %99 {offsets = [1, 0], sizes = [1, 8], strides = [1, 1]} : vector<8x8xf32> to vector<1x8xf32>
    %106 = arith.mulf %21, %104 : vector<1x8xf32>
    %107 = arith.subf %105, %106 : vector<1x8xf32>
    %108 = arith.mulf %23, %90#6 : vector<1x8xf32>
    %109 = arith.subf %107, %108 : vector<1x8xf32>
    %110 = vector.extract_strided_slice %99 {offsets = [2, 0], sizes = [1, 8], strides = [1, 1]} : vector<8x8xf32> to vector<1x8xf32>
    %111 = arith.mulf %21, %109 : vector<1x8xf32>
    %112 = arith.subf %110, %111 : vector<1x8xf32>
    %113 = arith.mulf %23, %104 : vector<1x8xf32>
    %114 = arith.subf %112, %113 : vector<1x8xf32>
    %115 = vector.extract_strided_slice %99 {offsets = [3, 0], sizes = [1, 8], strides = [1, 1]} : vector<8x8xf32> to vector<1x8xf32>
    %116 = arith.mulf %21, %114 : vector<1x8xf32>
    %117 = arith.subf %115, %116 : vector<1x8xf32>
    %118 = arith.mulf %23, %109 : vector<1x8xf32>
    %119 = arith.subf %117, %118 : vector<1x8xf32>
    %120 = vector.extract_strided_slice %99 {offsets = [4, 0], sizes = [1, 8], strides = [1, 1]} : vector<8x8xf32> to vector<1x8xf32>
    %121 = arith.mulf %21, %119 : vector<1x8xf32>
    %122 = arith.subf %120, %121 : vector<1x8xf32>
    %123 = arith.mulf %23, %114 : vector<1x8xf32>
    %124 = arith.subf %122, %123 : vector<1x8xf32>
    %125 = vector.extract_strided_slice %99 {offsets = [5, 0], sizes = [1, 8], strides = [1, 1]} : vector<8x8xf32> to vector<1x8xf32>
    %126 = arith.mulf %21, %124 : vector<1x8xf32>
    %127 = arith.subf %125, %126 : vector<1x8xf32>
    %128 = arith.mulf %23, %119 : vector<1x8xf32>
    %129 = arith.subf %127, %128 : vector<1x8xf32>
    %130 = vector.extract_strided_slice %99 {offsets = [6, 0], sizes = [1, 8], strides = [1, 1]} : vector<8x8xf32> to vector<1x8xf32>
    %131 = arith.mulf %21, %129 : vector<1x8xf32>
    %132 = arith.subf %130, %131 : vector<1x8xf32>
    %133 = arith.mulf %23, %124 : vector<1x8xf32>
    %134 = arith.subf %132, %133 : vector<1x8xf32>
    %135 = vector.extract_strided_slice %99 {offsets = [7, 0], sizes = [1, 8], strides = [1, 1]} : vector<8x8xf32> to vector<1x8xf32>
    %136 = arith.mulf %21, %134 : vector<1x8xf32>
    %137 = arith.subf %135, %136 : vector<1x8xf32>
    %138 = arith.mulf %23, %129 : vector<1x8xf32>
    %139 = arith.subf %137, %138 : vector<1x8xf32>
    %140 = tpu.concatenate %104, %109, %114, %119, %124, %129, %134, %139 in 0 : vector<1x8xf32>, vector<1x8xf32>, vector<1x8xf32>, vector<1x8xf32>, vector<1x8xf32>, vector<1x8xf32>, vector<1x8xf32>, vector<1x8xf32> -> vector<8x8xf32>
    %cst_8 = arith.constant -1.000000e+00 : f32
    %cst_9 = arith.constant 1.000000e+00 : f32
    %141 = vector.broadcast %cst_8 : f32 to vector<8x8xf32>
    %142 = arith.maximumf %141, %140 : vector<8x8xf32>
    %143 = vector.broadcast %cst_9 : f32 to vector<8x8xf32>
    %144 = arith.minimumf %143, %142 : vector<8x8xf32>
    %c1016 = arith.constant 1016 : index
    %c0_10 = arith.constant 0 : index
    %145 = vector.load %arg4[%c1016, %c0_10] : memref<1024x8xf32, #tpu.memory_space<vmem>>, vector<8x8xf32>
    tpu.vector_store %arg4[%c1016, %c0_10], %144 {strides = array<i32>} : memref<1024x8xf32, #tpu.memory_space<vmem>>, vector<8x8xf32>,
    %146 = vector.extract_strided_slice %90#8 {offsets = [7, 0], sizes = [1, 8], strides = [1, 1]} : vector<8x8xf32> to vector<1x8xf32>
    %147 = vector.extract_strided_slice %90#8 {offsets = [6, 0], sizes = [1, 8], strides = [1, 1]} : vector<8x8xf32> to vector<1x8xf32>
    %148 = tpu.concatenate %90#1, %90#0, %90#3, %90#2, %147, %146, %134, %139 in 0 : vector<1x8xf32>, vector<1x8xf32>, vector<1x8xf32>, vector<1x8xf32>, vector<1x8xf32>, vector<1x8xf32>, vector<1x8xf32>, vector<1x8xf32> -> vector<8x8xf32>
    %c0_11 = arith.constant 0 : index
    %c0_12 = arith.constant 0 : index
    %149 = vector.load %arg5[%c0_11, %c0_12] : memref<8x8xf32, #tpu.memory_space<vmem>>, vector<8x8xf32>
    tpu.vector_store %arg5[%c0_11, %c0_12], %148 {strides = array<i32>} : memref<8x8xf32, #tpu.memory_space<vmem>>, vector<8x8xf32>,
    return
  }
  func.func @transform_0(%arg0: i32, %arg1: i32) -> i32 {
    %c0_i32 = arith.constant 0 : i32
    %c0_i32_0 = arith.constant 0 : i32
    return %c0_i32 : i32
  }
  func.func @transform_1(%arg0: i32, %arg1: i32) -> (i32, i32) {
    %c0_i32 = arith.constant 0 : i32
    return %arg1, %arg0 : i32, i32
  }
  func.func @transform_2(%arg0: i32, %arg1: i32) -> (i32, i32) {
    %c0_i32 = arith.constant 0 : i32
    return %arg1, %arg0 : i32, i32
  }
}

</mosaic_0001>

<bundles_post_ra>
// kernel: tpu_custom_call.1
= control target key start
LH: loop header
LB: loop body
LE: loop exit
PB: predicated region body
PF: predicated region fallthrough
CT: control target
= control target key end

     0   :  { %7 = vsyncpa [#allocation4], 0  ;;  %s1082_s9 = smov 0   ;;  %s1084_s10 = smov 0   ;;  %s1448_s0 = inlined_call_operand.vmem [shape: f32[10], index: 0, kind: input, shape index: {}]   ;;  %s1449_s1 = inlined_call_operand.vmem [shape: f32[4096,8], index: 1, kind: input, shape index: {}]   ;;  %s1450_s2 = inlined_call_operand.vmem [shape: f32[4096,8], index: 2, kind: output, shape index: {}]  }
   0x1   :  { %s1086_s11 = smov 0  }
   0x2 LB: > { %s812_s12 = sadd.s32 4294967295, %s1027_s11   ;;  %s22_s13 = sadd.s32 1, %s1023_s10  ;;  %s1027_s11 = sphi %s1086_s11, %s13_s11   ;;  %s1023_s10 = sphi %s1084_s10, %s1467_s10   ;;  %s1019_s9 = sphi %s1082_s9, %s1466_s9  }
   0x3   : > { %p23_p0 = scmp.ge.s32.totalorder %s22_s13, 4  ;;  %p814_p1 = scmp.ge.s32.totalorder %s1027_s11, 1 }
   0x4   : > { %p107_p2 = scmp.lt.s32.totalorder %s1027_s11, 5  ;;  %p1107_p4 = scmp.eq.s32.totalorder %s812_s12, 0 }
   0x5   : > { %s1469_s13 = smov (%p23_p0, %s22_s13), 0  ;;  %s120_s18 = sshll.u32 %s1448_s0, 4  ;;  %s121_s18 = int_to_ptr.vmem [resolvable:$true] %s120_s18 }
   0x6   : > { %p1103_p3 = pnand %p814_p1, %p107_p2  ;;  %s950_s19 = scalar_lea.vmem %s121_s18, 16 }
   0x7   : > { %p951_p7 = scmp.ne.s32.totalorder %s121_s18, %s950_s19  ;;  %p958_p11 = scmp.lt.s32.totalorder %s121_s18, %s121_s18 }
   0x8   : > { %p846_p5 = pneg %p1103_p3  ;;  %p959_p12 = scmp.lt.s32.totalorder %s950_s19, %s950_s19 }
   0xa   : > { %p847_p6 = pnand %p1107_p4, %p846_p5  ;;  %p960_p13 = por %p959_p12, %p958_p11 }
   0xc   : > { %p952_p8 = pneg %p847_p6 }
   0xe   : > { %p953_p9 = pnand %p952_p8, %p951_p7 }
  0x10   : > { %p954_p10 = pneg %p953_p9 }
  0x12   : > { %p961_p0 = pnand %p960_p13, %p954_p10 }
  0x14   : > { %964 = shalt.err (!%p961_p0)
}
  0x15   : > { %s1065_s20 = smov [#allocation3]   ;;  %145 = sbr.rel (%p1103_p3) target bundleno = 266 (0x10a), region = 28 }
  0x16   : > { %849 = dma.vmem_to_smem (!%p847_p6), %s121_s18, 16, %s1065_s20, [#allocation4]  }
  0x1c   : > { %1014 = dma.done.wait (%p1107_p4), [#allocation4], 16  }
  0x1d   : > { %1016 = vsyncadd (%p1107_p4), [#allocation4], 4294967280 }
  0x1e   : > { %151 = sfence }
  0x1f   : > { %s819_s21 = sshll.u32 %s1019_s9, 7  ;;  %p823_p2 = scmp.ne.s32.totalorder %s1019_s9, 0 }
  0x20   : > { %p175_p1 = scmp.lt.s32.totalorder %s819_s21, 511  ;;  %vm196_vm0 = vcmask (!%p823_p2), 64512   ;;  %v1066_v0 = vmov (!%p823_p2), 0.0  }
  0x21   : > { %195 = sbr.rel (%p823_p2) target bundleno = 40 (0x28), region = 36  ;;  %197 = vst.msk [vmem:[#allocation2] sm:$0xff] (!%p823_p2), %vm196_vm0, %v1066_v0 }
  0x22   : > { %s1471_s21 = smov (!%p175_p1, %s819_s21), 511 }
  0x23   : > { %s820_s22 = sshll.u32 %s1471_s21, 3 }
  0x24   : > { %s1128_s25 = scalar_lea.vmem %s1449_s1, %s820_s22  ;;  %s1133_s28 = scalar_lea.vmem %s1450_s2, %s820_s22 }
  0x28 PF: > { %v1136_v1 = vld [vmem:[#allocation2] sm:$0xff]   ;;  %s1138_s29 = sld [smem:[#allocation3]]  ;;  %s1140_s30 = sld [smem:[#allocation3 + $0x1]]  ;;  %vm226_vm1 = vcmask 1040384   ;;  %vm230_vm2 = vcmask 1041408   ;;  %vm315_vm3 = vcmask 1042432  }
  0x29   : > { %v1143_v2 = vld [vmem:[%s1128_s25] sm:$0xff]   ;;  %s1145_s3 = sld [smem:[#allocation3 + $0x2]]  ;;  %s826_s4 = sld [smem:[#allocation3 + $0x3]]  ;;  %v221_v3 = vrot.slane %v1136_v1, 1  ;;  %v327_v8 = vrot.slane %v1136_v1, 5   ;;  %v329_v9 = vrot.slane %v1136_v1, 4  }
  0x2a   : > { %v224_v4 = vrot.slane %v1143_v2, 7  ;;  %s827_s5 = sld [smem:[#allocation3 + $0x4]]  ;;  %s1149_s6 = sld [smem:[#allocation3 + $0x5]]  ;;  %v228_v5 = vrot.slane %v1143_v2, 6  ;;  %vm317_vm4 = vcmask 1043456   ;;  %vm319_vm5 = vcmask 1044480  }
  0x2b   : > { %s1152_s7 = sld [smem:[#allocation3 + $0x6]]  ;;  %s1154_s8 = sld [smem:[#allocation3 + $0x7]]  ;;  %vm321_vm6 = vcmask 1045504   ;;  %vm323_vm7 = vcmask 1046528  }
  0x2c   : > { %s831_s9 = sld [smem:[#allocation3 + $0x8]]  ;;  %s832_s12 = sld [smem:[#allocation3 + $0x9]]  ;;  %v227_v6 = vsel %vm226_vm1, %v221_v3, %v224_v4  ;;  %v231_v7 = vsel %vm230_vm2, %v1136_v1, %v228_v5 }
  0x2d   : > { %s1229_s14 = smov 1  }
  0x2e   : > { %v200_v10 = vstv %s1138_s29  ;;  %v202_v11 = vstv %s1140_s30 }
  0x2f   : > { %v204_v12 = vstv %s1145_s3  ;;  %v1164_v13 = vstv %s826_s4  ;;  %v232_v14 = vmul.f32 %v1143_v2, %v200_v10  ;;  %v233_v15 = vmul.f32 %v227_v6, %v202_v11 }
  0x30   : > { %v1171_v16 = vstv %s827_s5  ;;  %v210_v17 = vstv %s1149_s6  ;;  %v235_v18 = vmul.f32 %v231_v7, %v204_v12  ;;  %v237_v19 = vmul.f32 %v1164_v13, %v1136_v1 }
  0x31   : > { %v212_v20 = vstv %s1152_s7  ;;  %v214_v21 = vstv %s1154_s8  ;;  %v234_v22 = vadd.f32 %v233_v15, %v232_v14  ;;  %v242_v23 = vmul.f32 %v1171_v16, %v1136_v1 }
  0x32   : > { %v1182_v24 = vstv %s831_s9  ;;  %v1184_v25 = vstv %s832_s12  ;;  %v239_v26 = vrot.slane %v237_v19, 3 }
  0x33   : > { %v236_v27 = vadd.f32 %v235_v18, %v234_v22  ;;  %v244_v28 = vrot.slane %v242_v23, 2 }
  0x35   : > { %v241_v29 = vsub.f32 %v236_v27, %v239_v26 }
  0x37   : > { %v246_v30 = vsub.f32 %v241_v29, %v244_v28 }
  0x39   : > { %v247_v31 = vmul.f32 %v246_v30, %v1164_v13  ;;  %v258_v35 = vmul.f32 %v246_v30, %v1171_v16 }
  0x3b   : > { %v249_v32 = vrot.slane %v247_v31, 7  ;;  %v260_v38 = vrot.slane %v258_v35, 6  ;;  %v1454_v31 = vmov %v1136_v1 }
  0x3d   : > { %v251_v33 = vsub.f32 %v236_v27, %v249_v32 }
  0x3f   : > { %v252_v34 = vsub.f32 %v251_v33, %v244_v28 }
  0x41   : > { %v253_v36 = vmul.f32 %v252_v34, %v1164_v13  ;;  %v268_v41 = vmul.f32 %v252_v34, %v1171_v16  ;;  %v313_v60 = vsel %vm226_vm1, %v246_v30, %v252_v34  ;;  %v1453_v30 = vmov %v1136_v1 }
  0x43   : > { %v255_v37 = vrot.slane %v253_v36, 7  ;;  %v270_v44 = vrot.slane %v268_v41, 6 }
  0x45   : > { %v257_v39 = vsub.f32 %v236_v27, %v255_v37 }
  0x47   : > { %v262_v40 = vsub.f32 %v257_v39, %v260_v38 }
  0x49   : > { %v263_v42 = vmul.f32 %v262_v40, %v1164_v13  ;;  %v278_v47 = vmul.f32 %v262_v40, %v1171_v16  ;;  %v314_v62 = vsel %vm230_vm2, %v313_v60, %v262_v40 }
  0x4b   : > { %v265_v43 = vrot.slane %v263_v42, 7  ;;  %v280_v50 = vrot.slane %v278_v47, 6 }
  0x4d   : > { %v267_v45 = vsub.f32 %v236_v27, %v265_v43 }
  0x4f   : > { %v272_v46 = vsub.f32 %v267_v45, %v270_v44 }
  0x51   : > { %v273_v48 = vmul.f32 %v272_v46, %v1164_v13  ;;  %v288_v53 = vmul.f32 %v272_v46, %v1171_v16  ;;  %v316_v4 = vsel %vm315_vm3, %v314_v62, %v272_v46 }
  0x53   : > { %v275_v49 = vrot.slane %v273_v48, 7  ;;  %v290_v56 = vrot.slane %v288_v53, 6 }
  0x55   : > { %v277_v51 = vsub.f32 %v236_v27, %v275_v49 }
  0x57   : > { %v282_v52 = vsub.f32 %v277_v51, %v280_v50 }
  0x59   : > { %v283_v54 = vmul.f32 %v282_v52, %v1164_v13  ;;  %v298_v59 = vmul.f32 %v282_v52, %v1171_v16  ;;  %v318_v7 = vsel %vm317_vm4, %v316_v4, %v282_v52 }
  0x5b   : > { %v285_v55 = vrot.slane %v283_v54, 7  ;;  %v300_v0 = vrot.slane %v298_v59, 6 }
  0x5d   : > { %v287_v57 = vsub.f32 %v236_v27, %v285_v55 }
  0x5f   : > { %v292_v58 = vsub.f32 %v287_v57, %v290_v56 }
  0x61   : > { %v293_v61 = vmul.f32 %v292_v58, %v1164_v13  ;;  %v308_v6 = vmul.f32 %v292_v58, %v1171_v16  ;;  %v320_v19 = vsel %vm319_vm5, %v318_v7, %v292_v58 }
  0x63   : > { %v295_v63 = vrot.slane %v293_v61, 7  ;;  %v310_v18 = vrot.slane %v308_v6, 6 }
  0x65   : > { %v297_v3 = vsub.f32 %v236_v27, %v295_v63 }
  0x67   : > { %v302_v5 = vsub.f32 %v297_v3, %v300_v0  }
  0x69   : > { %v303_v14 = vmul.f32 %v302_v5, %v1164_v13  ;;  %v322_v23 = vsel %vm321_vm6, %v320_v19, %v302_v5 }
  0x6b   : > { %v305_v15 = vrot.slane %v303_v14, 7 }
  0x6d   : > { %v307_v22 = vsub.f32 %v236_v27, %v305_v15 }
  0x6f   : > { %v312_v26 = vsub.f32 %v307_v22, %v310_v18  }
  0x71   : > { %v324_v28 = vsel %vm323_vm7, %v322_v23, %v312_v26 }
  0x72   : > { %v833_v29 = vclamps-f32 %v324_v28, 1.0  }
  0x73 LB: >> { %s834_s15 = sshll.u32 %s1063_s14, 3  ;;  %v351_v27 = vrot.slane %v1059_v2, 7  ;;  %v357_v32 = vrot.slane %v1059_v2, 6  ;;  %v367_v36 = vmul.f32 %v1055_v26, %v1164_v13  ;;  %v1252_v37 = vrot.slane %v1031_v29, 7   ;;  %s835_s17 = sadd.s32 4294967295, %s1063_s14  ;;  %s1063_s14 = sphi %s1229_s14, %s336_s14   ;;  %v1059_v2 = vphi %v1143_v2, %v1465_v2   ;;  %v1055_v26 = vphi %v312_v26, %v1464_v26   ;;  %v1051_v5 = vphi %v302_v5, %v1463_v5   ;;  %v1047_v8 = vphi %v327_v8, %v1462_v8   ;;  %v1043_v9 = vphi %v329_v9, %v1461_v9   ;;  %v1039_v31 = vphi %v1454_v31, %v1460_v31   ;;  %v1035_v30 = vphi %v1453_v30, %v1459_v30   ;;  %v1031_v29 = vphi %v833_v29, %v1458_v29  }
  0x74   : >> { %s348_s16 = scalar_lea.vmem %s1128_s25, %s834_s15  ;;  %v461_v38 = vrot.slane %v1047_v8, 7  ;;  %v372_v40 = vmul.f32 %v1051_v5, %v1171_v16  ;;  %v1259_v41 = vrot.slane %v1031_v29, 6   ;;  %v467_v47 = vmul.f32 %v1031_v29, %v210_v17  ;;  %s836_s18 = sshll.u32 %s835_s17, 3 }
  0x75   : >> { %v1244_v1 = vld [vmem:[%s348_s16] sm:$0xff]   ;;  %v459_v44 = vsel %vm226_vm1, %v1047_v8, %v1252_v37  ;;  %v472_v49 = vmul.f32 %v1039_v31, %v1182_v24  ;;  %v369_v51 = vrot.slane %v367_v36, 7  ;;  %v477_v53 = vmul.f32 %v1035_v30, %v1184_v25  ;;  %s561_s19 = scalar_lea.vmem %s1133_s28, %s836_s18  ;;  %s336_s14 = sadd.s32 1, %s1063_s14  }
  0x76   : >> { %v354_v33 = vrot.slane %v1244_v1, 7  ;;  %v359_v34 = vrot.slane %v1244_v1, 6  ;;  %v362_v35 = vmul.f32 %v1244_v1, %v200_v10  ;;  %v465_v45 = vsel %vm226_vm1, %v1043_v9, %v461_v38  ;;  %p333_p3 = scmp.ge.s32.totalorder %s336_s14, 128  }
  0x77   : >> { %v466_v46 = vsel %vm230_vm2, %v465_v45, %v1259_v41  ;;  %v468_v48 = vmul.f32 %v459_v44, %v212_v20  ;;  %v474_v55 = vrot.slane %v472_v49, 7  ;;  %v374_v9 = vrot.slane %v372_v40, 6 }
  0x78   : >> { %v356_v39 = vsel %vm226_vm1, %v351_v27, %v354_v33  ;;  %v361_v2 = vsel %vm230_vm2, %v357_v32, %v359_v34  ;;  %v470_v52 = vmul.f32 %v466_v46, %v214_v21  ;;  %v479_v57 = vrot.slane %v477_v53, 6 }
  0x79   : >> { %v363_v42 = vmul.f32 %v356_v39, %v202_v11  ;;  %v365_v43 = vmul.f32 %v361_v2, %v204_v12  ;;  %v469_v54 = vadd.f32 %v468_v48, %v467_v47  ;;  %v382_v61 = vmul.f32 %v1055_v26, %v1171_v16 }
  0x7a   : >> { %v487_v63 = vmul.f32 %v1039_v31, %v1184_v25  ;;  %vm562_vm8 = vcmask 64512  }
  0x7b   : >> { %v364_v50 = vadd.f32 %v363_v42, %v362_v35  ;;  %v1280_v56 = vadd.f32 %v470_v52, %v469_v54  ;;  %v384_v5 = vrot.slane %v382_v61, 6 }
  0x7c   : >> { %v489_v7 = vrot.slane %v487_v63, 6 }
  0x7d   : >> { %v1278_v8 = vadd.f32 %v365_v43, %v364_v50  ;;  %v476_v59 = vsub.f32 %v1280_v56, %v474_v55 }
  0x7f   : >> { %v371_v58 = vsub.f32 %v1278_v8, %v369_v51  ;;  %v1287_v62 = vsub.f32 %v476_v59, %v479_v57 }
  0x81   : >> { %v1284_v60 = vsub.f32 %v371_v58, %v374_v9  ;;  %v482_v3 = vmul.f32 %v1287_v62, %v1182_v24  ;;  %v497_v23 = vmul.f32 %v1287_v62, %v1184_v25 }
  0x83   : >> { %v377_v0 = vmul.f32 %v1284_v60, %v1164_v13  ;;  %v484_v6 = vrot.slane %v482_v3, 7  ;;  %v392_v19 = vmul.f32 %v1284_v60, %v1171_v16  ;;  %v499_v27 = vrot.slane %v497_v23, 6 }
  0x85   : >> { %v379_v4 = vrot.slane %v377_v0, 7  ;;  %v486_v15 = vsub.f32 %v1280_v56, %v484_v6  ;;  %v394_v30 = vrot.slane %v392_v19, 6 }
  0x87   : >> { %v381_v14 = vsub.f32 %v1278_v8, %v379_v4  ;;  %v491_v22 = vsub.f32 %v486_v15, %v489_v7 }
  0x89   : >> { %v386_v18 = vsub.f32 %v381_v14, %v384_v5  ;;  %v492_v28 = vmul.f32 %v491_v22, %v1182_v24  ;;  %v507_v39 = vmul.f32 %v491_v22, %v1184_v25 }
  0x8b   : >> { %v387_v26 = vmul.f32 %v386_v18, %v1164_v13  ;;  %v494_v31 = vrot.slane %v492_v28, 7  ;;  %v402_v36 = vmul.f32 %v386_v18, %v1171_v16  ;;  %v509_v45 = vrot.slane %v507_v39, 6 }
  0x8d   : >> { %v389_v29 = vrot.slane %v387_v26, 7  ;;  %v496_v33 = vsub.f32 %v1280_v56, %v494_v31  ;;  %v404_v43 = vrot.slane %v402_v36, 6 }
  0x8f   : >> { %v391_v32 = vsub.f32 %v1278_v8, %v389_v29  ;;  %v501_v38 = vsub.f32 %v496_v33, %v499_v27  ;;  %v447_v29 = vsel %vm226_vm1, %v1284_v60, %v386_v18  ;;  %v552_v27 = vsel %vm226_vm1, %v1287_v62, %v491_v22 }
  0x91   : >> { %v396_v35 = vsub.f32 %v391_v32, %v394_v30  ;;  %v502_v40 = vmul.f32 %v501_v38, %v1182_v24  ;;  %v517_v51 = vmul.f32 %v501_v38, %v1184_v25 }
  0x93   : >> { %v397_v2 = vmul.f32 %v396_v35, %v1164_v13  ;;  %v504_v44 = vrot.slane %v502_v40, 7  ;;  %v412_v49 = vmul.f32 %v396_v35, %v1171_v16  ;;  %v519_v57 = vrot.slane %v517_v51, 6 }
  0x94   : >> { %v448_v33 = vsel %vm230_vm2, %v447_v29, %v396_v35  ;;  %v553_v40 = vsel %vm230_vm2, %v552_v27, %v501_v38 }
  0x95   : >> { %v399_v42 = vrot.slane %v397_v2, 7  ;;  %v506_v47 = vsub.f32 %v1280_v56, %v504_v44  ;;  %v414_v55 = vrot.slane %v412_v49, 6 }
  0x97   : >> { %v401_v46 = vsub.f32 %v1278_v8, %v399_v42  ;;  %v511_v50 = vsub.f32 %v506_v47, %v509_v45 }
  0x99   : >> { %v406_v48 = vsub.f32 %v401_v46, %v404_v43  ;;  %v512_v53 = vmul.f32 %v511_v50, %v1182_v24  ;;  %v527_v3 = vmul.f32 %v511_v50, %v1184_v25  ;;  %v554_v62 = vsel %vm315_vm3, %v553_v40, %v511_v50 }
  0x9b   : >> { %v407_v52 = vmul.f32 %v406_v48, %v1164_v13  ;;  %v514_v9 = vrot.slane %v512_v53, 7  ;;  %v422_v63 = vmul.f32 %v406_v48, %v1171_v16  ;;  %v529_v15 = vrot.slane %v527_v3, 6 }
  0x9c   : >> { %v449_v18 = vsel %vm315_vm3, %v448_v33, %v406_v48 }
  0x9d   : >> { %v409_v54 = vrot.slane %v407_v52, 7  ;;  %v516_v59 = vsub.f32 %v1280_v56, %v514_v9  ;;  %v424_v7 = vrot.slane %v422_v63, 6 }
  0x9f   : >> { %v411_v58 = vsub.f32 %v1278_v8, %v409_v54  ;;  %v521_v0 = vsub.f32 %v516_v59, %v519_v57 }
  0xa1   : >> { %v416_v61 = vsub.f32 %v411_v58, %v414_v55  ;;  %v522_v5 = vmul.f32 %v521_v0, %v1182_v24  ;;  %v537_v31 = vmul.f32 %v521_v0, %v1184_v25  ;;  %v555_v49 = vsel %vm317_vm4, %v554_v62, %v521_v0 }
  0xa3   : >> { %v417_v4 = vmul.f32 %v416_v61, %v1164_v13  ;;  %v524_v14 = vrot.slane %v522_v5, 7  ;;  %v432_v28 = vmul.f32 %v416_v61, %v1171_v16  ;;  %v539_v43 = vrot.slane %v537_v31, 6 }
  0xa4   : >> { %v450_v45 = vsel %vm317_vm4, %v449_v18, %v416_v61 }
  0xa5   : >> { %v419_v6 = vrot.slane %v417_v4, 7  ;;  %v526_v23 = vsub.f32 %v1280_v56, %v524_v14  ;;  %v434_v2 = vrot.slane %v432_v28, 6 }
  0xa7   : >> { %v421_v19 = vsub.f32 %v1278_v8, %v419_v6  ;;  %v531_v30 = vsub.f32 %v526_v23, %v529_v15  ;;  %v569_v6 = vrot.slane (%p333_p3), %v1252_v37, 7 }
  0xa9   : >> { %v426_v26 = vsub.f32 %v421_v19, %v424_v7  ;;  %v532_v36 = vmul.f32 %v531_v30, %v1182_v24  ;;  %v547_v38 = vmul.f32 %v531_v30, %v1184_v25  ;;  %v556_v55 = vsel %vm319_vm5, %v555_v49, %v531_v30 }
  0xaa   : > { %v573_v23 = vsel (%p333_p3), %vm226_vm1, %v1259_v41, %v569_v6 }
  0xab   : >> { %v427_v32 = vmul.f32 %v426_v26, %v1164_v13  ;;  %v534_v42 = vrot.slane %v532_v36, 7  ;;  %v442_v35 = vmul.f32 %v426_v26, %v1171_v16  ;;  %v451_v50 = vsel %vm319_vm5, %v450_v45, %v426_v26 }
  0xac   : >> { %v549_v54 = vrot.slane %v547_v38, 6 }
  0xad   : >> { %v429_v39 = vrot.slane %v427_v32, 7  ;;  %v536_v44 = vsub.f32 %v1280_v56, %v534_v42  ;;  %v444_v52 = vrot.slane %v442_v35, 6 }
  0xaf   : >> { %v431_v60 = vsub.f32 %v1278_v8, %v429_v39  ;;  %v541_v46 = vsub.f32 %v536_v44, %v539_v43  }
  0xb1   : >> { %v1336_v5 = vsub.f32 %v431_v60, %v434_v2   ;;  %v542_v48 = vmul.f32 %v541_v46, %v1182_v24  ;;  %v557_v61 = vsel %vm321_vm6, %v556_v55, %v541_v46  ;;  %v1459_v30 = vmov %v541_v46 }
  0xb2   : >> { %v1465_v2 = vmov %v1244_v1  ;;  %v585_v12 = vmul.f32 (%p333_p3), %v541_v46, %v1184_v25 }
  0xb3   : >> { %v1455_v22 = vmov %v1336_v5  ;;  %v544_v53 = vrot.slane %v542_v48, 7 }
  0xb4   : >> { %v437_v47 = vmul.f32 %v1455_v22, %v1164_v13  ;;  %v452_v57 = vsel %vm321_vm6, %v451_v50, %v1455_v22  ;;  %v1463_v5 = vmov %v1455_v22 }
  0xb5   : >> { %v546_v58 = vsub.f32 %v1280_v56, %v544_v53  ;;  %v675_v53 = vrot.slane (%p333_p3), %v1455_v22, 4 }
  0xb6   : >> { %v439_v51 = vrot.slane %v437_v47, 7 }
  0xb7   : >> { %v551_v63 = vsub.f32 %v546_v58, %v549_v54  }
  0xb8   : >> { %v441_v9 = vsub.f32 %v1278_v8, %v439_v51 }
  0xb9   : >> { %v558_v4 = vsel %vm323_vm7, %v557_v61, %v551_v63  ;;  %v1460_v31 = vmov %v551_v63  ;;  %v580_v15 = vmul.f32 (%p333_p3), %v551_v63, %v1182_v24  ;;  %v595_v30 = vmul.f32 (%p333_p3), %v551_v63, %v1184_v25 }
  0xba   : >> { %v1352_v26 = vsub.f32 %v441_v9, %v444_v52   ;;  %v838_v8 = vclamps-f32 %v558_v4, 1.0  ;;  %v1461_v9 = vmov %v1259_v41  ;;  %v682_v63 = vsel (%p333_p3), %vm230_vm2, %v359_v34, %v675_v53 }
  0xbb   : > { %335 = sbr.rel (!%p333_p3) target bundleno = 115 (0x73), region = 76  ;;  %v582_v5 = vrot.slane (%p333_p3), %v580_v15, 7  ;;  %v597_v41 = vrot.slane (%p333_p3), %v595_v30, 6 }
  0xbc   : >> { %v1456_v59 = vmov %v1352_v26  ;;  %563 = vst.msk [vmem:[%s561_s19] sm:$0xff] %vm562_vm8, %v838_v8  ;;  %v1462_v8 = vmov %v1252_v37 }
  0xbd   : >> { %v453_v0 = vsel %vm323_vm7, %v452_v57, %v1456_v59  ;;  %v1464_v26 = vmov %v1456_v59  ;;  %v678_v58 = vrot.slane (%p333_p3), %v1456_v59, 4 }
  0xbe   : >> { %v1357_v29 = vclamps-f32 %v453_v0, 1.0  }
  0xbf   : > { %v683_v6 = vsel (%p333_p3), %vm315_vm3, %v682_v63, %v678_v58 }
  0xc0   : >> { %v1457_v3 = vmov %v1357_v29 }
  0xc1   : >> { %v1458_v29 = vmov %v1457_v3  ;;  %v565_v56 = vrot.slane (%p333_p3), %v1457_v3, 7  ;;  %v571_v7 = vrot.slane (%p333_p3), %v1457_v3, 6  ;;  %v575_v14 = vmul.f32 (%p333_p3), %v1457_v3, %v210_v17 }
  0xc2   : > { %v587_v17 = vrot.slane %v585_v12, 6  ;;  %v680_v8 = vrot.slane %v1457_v3, 2 }
  0xc3   : > { %v567_v19 = vsel %vm226_vm1, %v1252_v37, %v565_v56  ;;  %v574_v10 = vsel %vm230_vm2, %v573_v23, %v571_v7 }
  0xc4   : > { %v576_v11 = vmul.f32 %v567_v19, %v212_v20  ;;  %v578_v13 = vmul.f32 %v574_v10, %v214_v21  ;;  %v684_v15 = vsel %vm317_vm4, %v683_v6, %v680_v8 }
  0xc5   : > { %v685_v3 = vsel %vm319_vm5, %v684_v15, %v680_v8 }
  0xc6   : > { %v577_v16 = vadd.f32 %v576_v11, %v575_v14 }
  0xc8   : > { %v579_v26 = vadd.f32 %v578_v13, %v577_v16 }
  0xca   : > { %v584_v28 = vsub.f32 %v579_v26, %v582_v5 }
  0xcc   : > { %v589_v29 = vsub.f32 %v584_v28, %v587_v17 }
  0xce   : > { %v590_v37 = vmul.f32 %v589_v29, %v1182_v24  ;;  %v605_v20 = vmul.f32 %v589_v29, %v1184_v25 }
  0xd0   : > { %v592_v31 = vrot.slane %v590_v37, 7  ;;  %v607_v21 = vrot.slane %v605_v20, 6 }
  0xd2   : > { %v594_v27 = vsub.f32 %v579_v26, %v592_v31 }
  0xd4   : > { %v599_v32 = vsub.f32 %v594_v27, %v597_v41 }
  0xd6   : > { %v600_v33 = vmul.f32 %v599_v32, %v1182_v24  ;;  %v615_v40 = vmul.f32 %v599_v32, %v1184_v25  ;;  %v660_v9 = vsel %vm226_vm1, %v589_v29, %v599_v32 }
  0xd8   : > { %v602_v36 = vrot.slane %v600_v33, 7  ;;  %v617_v60 = vrot.slane %v615_v40, 6 }
  0xda   : > { %v604_v39 = vsub.f32 %v579_v26, %v602_v36 }
  0xdc   : > { %v609_v2 = vsub.f32 %v604_v39, %v607_v21 }
  0xde   : > { %v610_v42 = vmul.f32 %v609_v2, %v1182_v24  ;;  %v625_v62 = vmul.f32 %v609_v2, %v1184_v25  ;;  %v661_v61 = vsel %vm230_vm2, %v660_v9, %v609_v2 }
  0xe0   : > { %v612_v43 = vrot.slane %v610_v42, 7  ;;  %v627_v46 = vrot.slane %v625_v62, 6 }
  0xe2   : > { %v614_v18 = vsub.f32 %v579_v26, %v612_v43 }
  0xe4   : > { %v619_v44 = vsub.f32 %v614_v18, %v617_v60 }
  0xe6   : > { %v620_v35 = vmul.f32 %v619_v44, %v1182_v24  ;;  %v635_v49 = vmul.f32 %v619_v44, %v1184_v25  ;;  %v662_v56 = vsel %vm315_vm3, %v661_v61, %v619_v44 }
  0xe8   : > { %v622_v45 = vrot.slane %v620_v35, 7  ;;  %v637_v52 = vrot.slane %v635_v49, 6 }
  0xea   : > { %v624_v38 = vsub.f32 %v579_v26, %v622_v45 }
  0xec   : > { %v629_v47 = vsub.f32 %v624_v38, %v627_v46 }
  0xee   : > { %v630_v48 = vmul.f32 %v629_v47, %v1182_v24  ;;  %v645_v55 = vmul.f32 %v629_v47, %v1184_v25  ;;  %v663_v59 = vsel %vm317_vm4, %v662_v56, %v629_v47 }
  0xf0   : > { %v632_v51 = vrot.slane %v630_v48, 7  ;;  %v647_v4 = vrot.slane %v645_v55, 6 }
  0xf2   : > { %v634_v50 = vsub.f32 %v579_v26, %v632_v51 }
  0xf4   : > { %v639_v54 = vsub.f32 %v634_v50, %v637_v52 }
  0xf6   : > { %v640_v57 = vmul.f32 %v639_v54, %v1182_v24  ;;  %v655_v14 = vmul.f32 %v639_v54, %v1184_v25  ;;  %v664_v23 = vsel %vm319_vm5, %v663_v59, %v639_v54 }
  0xf8   : > { %v642_v0 = vrot.slane %v640_v57, 7  ;;  %v657_v19 = vrot.slane %v655_v14, 6 }
  0xfa   : > { %v644_v22 = vsub.f32 %v579_v26, %v642_v0 }
  0xfc   : > { %v649_v7 = vsub.f32 %v644_v22, %v647_v4 }
  0xfe   : > { %v650_v1 = vmul.f32 %v649_v7, %v1182_v24  ;;  %v665_v11 = vsel %vm321_vm6, %v664_v23, %v649_v7  ;;  %v686_v12 = vsel %vm321_vm6, %v685_v3, %v649_v7 }
 0x100   : > { %v652_v34 = vrot.slane %v650_v1, 7 }
 0x102   : > { %v654_v10 = vsub.f32 %v579_v26, %v652_v34 }
 0x104   : > { %v659_v13 = vsub.f32 %v654_v10, %v657_v19 }
 0x106   : > { %v666_v25 = vsel %vm323_vm7, %v665_v11, %v659_v13  ;;  %v687_v16 = vsel %vm323_vm7, %v686_v12, %v659_v13 }
 0x107   : > { %v839_v5 = vclamps-f32 %v666_v25, 1.0  ;;  %688 = vst.msk [vmem:[#allocation2] sm:$0xff] %vm562_vm8, %v687_v16 }
 0x109   : > { %670 = vst.msk [vmem:[%s1133_s28 + $0x3f8] sm:$0xff] %vm562_vm8, %v839_v5 }
 0x10a PF: > { %s13_s11 = sadd.s32 1, %s1027_s11   ;;  %s1466_s9 = smov %s1023_s10 }
 0x10b   : > { %p10_p4 = scmp.ge.s32.totalorder %s13_s11, 6   ;;  %s1467_s10 = smov %s1469_s13 }
 0x10d   :  { %12 = sbr.rel (!%p10_p4) target bundleno = 2 (0x2), region = 87 }
 0x114   :  { %717 = vsyncpa [#allocation4], 1 }
 0x115   :  { %719 = vsyncpa [#allocation4 + $0x1], 1 }

</bundles_post_ra>
